<compile_context>
chip_gen: v7x
topology: tpu7x:2x2x1
jax: 0.10.0
libtpu: 0.0.40
codegen_flags: <defaults>
</compile_context>

<pallas_src>
import jax
import jax.numpy as jnp
from jax import lax
from jax.experimental import pallas as pl
from jax.experimental.pallas import tpu as pltpu

# ---- DiehlLIFParameters defaults (from the PyTorch NamedTuple) ----
DT = 0.001
TAU_SYN_EXC_INV = 1.0 / 5.0
TAU_SYN_INH_INV = 1.0 / 5.0
TAU_V_THRESH_INV = 1.0 / 10000.0
C_M_INV = 1.0 / 0.2
G_L = (1.0 / 20.0) * (1.0 / 0.2)
E_REV_I = -100.0
E_REV_E = 60.0
V_REST = -20.0
V_RESET = -70.0
V_THRESH = -10.0
V_THRESH_PLUS = 0.05
V_THRESH_MAX = 35.0

_LANE = 128
_SUBLANE = 8
_DECAY_E = 1.0 - DT * TAU_SYN_EXC_INV
_DECAY_I = 1.0 - DT * TAU_SYN_INH_INV
_DECAY_DVT = 1.0 - DT * TAU_V_THRESH_INV


def _round_up(n, m):
    return (n + m - 1) // m * m


def _pad2(a, rows, cols):
    return jnp.pad(a, ((0, rows - a.shape[0]), (0, cols - a.shape[1])))


def prepare_diehl_lif_weights(input_weights, recurrent_weights,
                              compute_dtype=jnp.bfloat16):
    """One-time weight prep: relu split, transpose, zero-pad, cast to bf16.

    Returns (wx, wz, meta) with
      wx : (I_pad, 2*H_pad) = [relu(W_in)^T  | relu(-W_in)^T ]
      wz : (H_pad, 2*H_pad) = [relu(W_rec)^T | relu(-W_rec)^T]
    The zero rows h..H_pad of wz absorb spurious spikes produced in the padded
    lanes of z/v -- do NOT remove this zero-padding invariant.
    """
    h, i = input_weights.shape
    i_pad = _round_up(i, _LANE)
    h_pad = _round_up(h, _LANE)
    w_in = input_weights.astype(jnp.float32)
    w_rec = recurrent_weights.astype(jnp.float32)
    wx = jnp.zeros((i_pad, 2 * h_pad), jnp.float32)
    wx = wx.at[:i, :h].set(jnp.maximum(w_in, 0.0).T)
    wx = wx.at[:i, h_pad:h_pad + h].set(jnp.maximum(-w_in, 0.0).T)
    wz = jnp.zeros((h_pad, 2 * h_pad), jnp.float32)
    wz = wz.at[:h, :h].set(jnp.maximum(w_rec, 0.0).T)
    wz = wz.at[:h, h_pad:h_pad + h].set(jnp.maximum(-w_rec, 0.0).T)
    return wx.astype(compute_dtype), wz.astype(compute_dtype), (i, h, i_pad, h_pad)


def _make_seq_kernel(t_total, tc, h_pad, unroll):
    """Kernel over one time-chunk of `tc` steps; state carried in registers."""

    def kernel(x_ref, wx_ref, wz_ref, st0_ref, zs_out, stf_out, st_s):
        c = pl.program_id(0)

        @pl.when(c == 0)
        def _init():
            st_s[...] = st0_ref[...]

        wx = wx_ref[...]
        wz = wz_ref[...]
        t0 = c * tc

        def step_fn(t, carry):
            z, v, ge, gi, dvt = carry
            x = x_ref[t]                                     # (B_pad, I_pad) bf16
            # fused excitatory|inhibitory synapse currents: (B_pad, 2*H_pad) f32
            syn = (jnp.dot(x, wx, preferred_element_type=jnp.float32)
                   + jnp.dot(z.astype(wz.dtype), wz,
                             preferred_element_type=jnp.float32))
            ge_n = (ge + syn[:, :h_pad]) * _DECAY_E
            gi_n = (gi + syn[:, h_pad:]) * _DECAY_I
            dv = DT * C_M_INV * (G_L * (V_REST - v)
                                 + ge_n * (E_REV_E - v)
                                 + gi_n * (E_REV_I - v))
            v_n = v + dv
            spike = (v_n - (V_THRESH + dvt)) > 0.0
            z_n = spike.astype(jnp.float32)
            v_n = jnp.where(spike, V_RESET, v_n)
            dvt_dec = _DECAY_DVT * dvt
            dvt_n = jnp.where(spike, dvt_dec + V_THRESH_PLUS, dvt_dec)
            dvt_n = jnp.clip(dvt_n, 0.0, V_THRESH_MAX)

            if t_total % tc != 0:
                # time axis was zero-padded to a chunk multiple: freeze state
                # for the padded steps so the final state equals step T-1.
                valid = (t0 + t) < t_total
                z_n = jnp.where(valid, z_n, z)
                v_n = jnp.where(valid, v_n, v)
                ge_n = jnp.where(valid, ge_n, ge)
                gi_n = jnp.where(valid, gi_n, gi)
                dvt_n = jnp.where(valid, dvt_n, dvt)

            zs_out[t] = z_n
            return (z_n, v_n, ge_n, gi_n, dvt_n)

        carry0 = (st_s[0], st_s[1], st_s[2], st_s[3], st_s[4])
        z, v, ge, gi, dvt = lax.fori_loop(0, tc, step_fn, carry0, unroll=unroll)

        # write state back to VMEM scratch only at the chunk boundary
        st_s[0] = z
        st_s[1] = v
        st_s[2] = ge
        st_s[3] = gi
        st_s[4] = dvt

        @pl.when(c == pl.num_programs(0) - 1)
        def _finalize():
            stf_out[...] = st_s[...]

    return kernel


def diehl_lif_recurrent_sequence(xs, input_weights=None, recurrent_weights=None,
                                 state=None, prepared=None, time_chunk=64):
    """Run T LIF steps. xs: (T, B, I). Returns (zs (T,B,H), final 5-tuple (B,H))."""
    t_total, b, i = xs.shape
    if prepared is None:
        prepared = prepare_diehl_lif_weights(input_weights, recurrent_weights)
    wx, wz, (wi, h, i_pad, h_pad) = prepared
    assert wi == i, "input size mismatch between xs and prepared weights"

    dtype = jnp.float32
    b_pad = _round_up(b, _SUBLANE)
    tc = min(time_chunk, t_total)
    n_chunks = (t_total + tc - 1) // tc
    t_pad = n_chunks * tc
    unroll = tc if tc <= 8 else 8

    # x/z are 0/1 spikes -> exact in bf16; halves the streamed x DMA traffic.
    xs_p = jnp.pad(xs.astype(wx.dtype),
                   ((0, t_pad - t_total), (0, b_pad - b), (0, i_pad - i)))
    if state is None:
        st0 = jnp.zeros((5, b_pad, h_pad), dtype)
    else:
        st0 = jnp.stack([_pad2(s.astype(dtype), b_pad, h_pad) for s in state])

    # VMEM budget (weights + double-buffered x/zs blocks + stacked state).
    weight_bytes = wx.size * wx.dtype.itemsize + wz.size * wz.dtype.itemsize
    stream_bytes = 2 * tc * b_pad * (i_pad * xs_p.dtype.itemsize + h_pad * 4)
    state_bytes = 4 * 5 * b_pad * h_pad * 4
    vmem_limit = int(min(100 << 20,
                         max(32 << 20,
                             2 * (weight_bytes + stream_bytes + state_bytes)
                             + (1 << 20))))

    state_spec = pl.BlockSpec((5, b_pad, h_pad), lambda c: (0, 0, 0))
    grid_spec = pltpu.PrefetchScalarGridSpec(
        num_scalar_prefetch=0,
        grid=(n_chunks,),
        in_specs=[
            pl.BlockSpec((tc, b_pad, i_pad), lambda c: (c, 0, 0)),   # x streamed
            pl.BlockSpec((i_pad, 2 * h_pad), lambda c: (0, 0)),      # Wx resident
            pl.BlockSpec((h_pad, 2 * h_pad), lambda c: (0, 0)),      # Wz resident
            state_spec,                                              # initial state
        ],
        out_specs=(
            pl.BlockSpec((tc, b_pad, h_pad), lambda c: (c, 0, 0)),   # zs streamed
            state_spec,                                              # final state
        ),
        scratch_shapes=[pltpu.VMEM((5, b_pad, h_pad), jnp.float32)],
    )

    zs_pad, stf = pl.pallas_call(
        _make_seq_kernel(t_total, tc, h_pad, unroll),
        out_shape=(jax.ShapeDtypeStruct((t_pad, b_pad, h_pad), dtype),
                   jax.ShapeDtypeStruct((5, b_pad, h_pad), dtype)),
        grid_spec=grid_spec,
        compiler_params=pltpu.CompilerParams(
            dimension_semantics=("arbitrary",),     # time carries state
            vmem_limit_bytes=vmem_limit),
    )(xs_p, wx, wz, st0)

    zs = zs_pad[:t_total, :b, :h]
    final = tuple(stf[k, :b, :h] for k in range(5))
    return zs, final


def diehl_lif_recurrent_cell(x, input_weights=None, recurrent_weights=None,
                             state=None, prepared=None):
    """Pallas equivalent of DiehlLIFRecurrentCell.forward (one timestep).

    x: (B, I); returns (z_new, (z_new, v, g_e, g_i, delta_v_thresh)).
    Pass `prepared=prepare_diehl_lif_weights(...)` to avoid re-running the
    weight prep every step when driving the cell from an outer loop.
    """
    zs, final = diehl_lif_recurrent_sequence(
        x[None], input_weights, recurrent_weights, state=state, prepared=prepared)
    return zs[0], final


# ---------------------------------------------------------------------------
# Pure-JAX reference (mirrors the PyTorch diehl_lif_step) for validation.
# ---------------------------------------------------------------------------
_HI = jax.lax.Precision.HIGHEST


def _ref_step(x, state, w_in, w_rec):
    z, v, g_e, g_i, dvt = state
    g_e = g_e + jnp.dot(x, jnp.maximum(w_in, 0.0).T, precision=_HI) \
              + jnp.dot(z, jnp.maximum(w_rec, 0.0).T, precision=_HI)
    g_i = g_i + jnp.dot(x, jnp.maximum(-w_in, 0.0).T, precision=_HI) \
              + jnp.dot(z, jnp.maximum(-w_rec, 0.0).T, precision=_HI)
    g_e = g_e + (-DT * TAU_SYN_EXC_INV) * g_e
    g_i = g_i + (-DT * TAU_SYN_INH_INV) * g_i
    dv = DT * C_M_INV * (G_L * (V_REST - v) + g_e * (E_REV_E - v) + g_i * (E_REV_I - v))
    v = v + dv
    z_new = (v - (V_THRESH + dvt) > 0).astype(v.dtype)
    v = (1.0 - z_new) * v + z_new * V_RESET
    dvt = jnp.clip((1.0 - DT * TAU_V_THRESH_INV) * dvt + V_THRESH_PLUS * z_new,
                   0.0, V_THRESH_MAX)
    return z_new, (z_new, v, g_e, g_i, dvt)


if __name__ == "__main__":
    batch, input_size, hidden_size, seq_len = 2, 16, 32, 8

    key = jax.random.PRNGKey(0)
    k_win, k_wrec, k_x = jax.random.split(key, 3)
    # Round the weights to bf16-representable values so the bf16 MXU path is
    # numerically equivalent to the f32 reference (spikes are exactly 0/1).
    input_weights = (jax.random.normal(k_win, (hidden_size, input_size), jnp.float32)
                     / jnp.sqrt(float(input_size))
                     ).astype(jnp.bfloat16).astype(jnp.float32)
    recurrent_weights = (jax.random.normal(k_wrec, (hidden_size, hidden_size), jnp.float32)
                         / jnp.sqrt(float(hidden_size))
                         ).astype(jnp.bfloat16).astype(jnp.float32)
    xs = jax.random.bernoulli(k_x, 0.3, (seq_len, batch, input_size)).astype(jnp.float32)

    prepared = prepare_diehl_lif_weights(input_weights, recurrent_weights)

    # --- single step (module.forward equivalent, weight prep cached) ---
    z1, state1 = diehl_lif_recurrent_cell(xs[0], prepared=prepared)
    jax.block_until_ready((z1, state1))

    # --- fused multi-step kernel (chunked time loop inside the kernel) ---
    zs, state_seq = diehl_lif_recurrent_sequence(xs, prepared=prepared)
    jax.block_until_ready((zs, state_seq))

    # --- validate against pure-JAX reference ---
    zeros = jnp.zeros((batch, hidden_size), jnp.float32)
    z_ref, st_ref = _ref_step(xs[0], (zeros,) * 5, input_weights, recurrent_weights)
    ok = bool(jnp.allclose(z1, z_ref, atol=5e-2))
    ok = ok and all(bool(jnp.allclose(a, b, atol=5e-2, rtol=1e-2))
                    for a, b in zip(state1, st_ref))

    st = (zeros,) * 5
    zs_ref = []
    for t in range(seq_len):
        z_t, st = _ref_step(xs[t], st, input_weights, recurrent_weights)
        zs_ref.append(z_t)
    zs_ref = jnp.stack(zs_ref)
    ok = ok and bool(jnp.allclose(zs, zs_ref, atol=5e-2))
    ok = ok and all(bool(jnp.allclose(a, b, atol=5e-2, rtol=1e-2))
                    for a, b in zip(state_seq, st))

    if not ok:
        raise RuntimeError("Pallas kernel does not match pure-JAX reference")
    print("KERNEL_OK")
</pallas_src>

<mosaic_0001>
module attributes {stable_mosaic.version = 11 : i64} {
  func.func @kernel(%arg0: i32, %arg1: memref<1x8x128xbf16, #tpu.memory_space<vmem>>, %arg2: memref<128x256xbf16, #tpu.memory_space<vmem>>, %arg3: memref<128x256xbf16, #tpu.memory_space<vmem>>, %arg4: memref<5x8x128xf32, #tpu.memory_space<vmem>>, %arg5: memref<1x8x128xf32, #tpu.memory_space<vmem>>, %arg6: memref<5x8x128xf32, #tpu.memory_space<vmem>>, %arg7: memref<5x8x128xf32, #tpu.memory_space<vmem>>) attributes {dimension_semantics = [#tpu.dimension_semantics<arbitrary>], iteration_bounds = array<i64: 1>, scalar_prefetch = 0 : i64, scratch_operands = 1 : i64, tpu.core_type = #tpu.core_type<tc>, window_params = [{transform_indices = @transform_0, window_bounds = array<i64: 1, 8, 128>}, {pipeline_mode = #tpu.pipeline_mode<synchronous>, transform_indices = @transform_1, window_bounds = array<i64: 128, 256>}, {pipeline_mode = #tpu.pipeline_mode<synchronous>, transform_indices = @transform_2, window_bounds = array<i64: 128, 256>}, {pipeline_mode = #tpu.pipeline_mode<synchronous>, transform_indices = @transform_3, window_bounds = array<i64: 5, 8, 128>}, {transform_indices = @transform_4, window_bounds = array<i64: 1, 8, 128>}, {pipeline_mode = #tpu.pipeline_mode<synchronous>, transform_indices = @transform_5, window_bounds = array<i64: 5, 8, 128>}]} {
    %c0_i32 = arith.constant 0 : i32
    %0 = arith.cmpi eq, %arg0, %c0_i32 : i32
    %1 = arith.extui %0 : i1 to i32
    %c0_i32_0 = arith.constant 0 : i32
    %2 = arith.cmpi ne, %1, %c0_i32_0 : i32
    scf.if %2 {
      %c0_52 = arith.constant 0 : index
      %c0_53 = arith.constant 0 : index
      %c0_54 = arith.constant 0 : index
      %85 = vector.load %arg4[%c0_52, %c0_53, %c0_54] : memref<5x8x128xf32, #tpu.memory_space<vmem>>, vector<5x8x128xf32>
      %c0_55 = arith.constant 0 : index
      %c0_56 = arith.constant 0 : index
      %c0_57 = arith.constant 0 : index
      %86 = vector.load %arg7[%c0_55, %c0_56, %c0_57] : memref<5x8x128xf32, #tpu.memory_space<vmem>>, vector<5x8x128xf32>
      tpu.vector_store %arg7[%c0_55, %c0_56, %c0_57], %85 {strides = array<i32>} : memref<5x8x128xf32, #tpu.memory_space<vmem>>, vector<5x8x128xf32>,
    } else {
    }
    %c0 = arith.constant 0 : index
    %c0_1 = arith.constant 0 : index
    %3 = vector.load %arg2[%c0, %c0_1] : memref<128x256xbf16, #tpu.memory_space<vmem>>, vector<128x256xbf16>
    %c0_2 = arith.constant 0 : index
    %c0_3 = arith.constant 0 : index
    %4 = vector.load %arg3[%c0_2, %c0_3] : memref<128x256xbf16, #tpu.memory_space<vmem>>, vector<128x256xbf16>
    %c0_4 = arith.constant 0 : index
    %c0_5 = arith.constant 0 : index
    %c0_6 = arith.constant 0 : index
    %5 = vector.load %arg7[%c0_4, %c0_5, %c0_6] : memref<5x8x128xf32, #tpu.memory_space<vmem>>, vector<1x8x128xf32>
    %6 = vector.shape_cast %5 : vector<1x8x128xf32> to vector<8x128xf32>
    %c1 = arith.constant 1 : index
    %c0_7 = arith.constant 0 : index
    %c0_8 = arith.constant 0 : index
    %7 = vector.load %arg7[%c1, %c0_7, %c0_8] : memref<5x8x128xf32, #tpu.memory_space<vmem>>, vector<1x8x128xf32>
    %8 = vector.shape_cast %7 : vector<1x8x128xf32> to vector<8x128xf32>
    %c2 = arith.constant 2 : index
    %c0_9 = arith.constant 0 : index
    %c0_10 = arith.constant 0 : index
    %9 = vector.load %arg7[%c2, %c0_9, %c0_10] : memref<5x8x128xf32, #tpu.memory_space<vmem>>, vector<1x8x128xf32>
    %10 = vector.shape_cast %9 : vector<1x8x128xf32> to vector<8x128xf32>
    %c3 = arith.constant 3 : index
    %c0_11 = arith.constant 0 : index
    %c0_12 = arith.constant 0 : index
    %11 = vector.load %arg7[%c3, %c0_11, %c0_12] : memref<5x8x128xf32, #tpu.memory_space<vmem>>, vector<1x8x128xf32>
    %12 = vector.shape_cast %11 : vector<1x8x128xf32> to vector<8x128xf32>
    %c4 = arith.constant 4 : index
    %c0_13 = arith.constant 0 : index
    %c0_14 = arith.constant 0 : index
    %13 = vector.load %arg7[%c4, %c0_13, %c0_14] : memref<5x8x128xf32, #tpu.memory_space<vmem>>, vector<1x8x128xf32>
    %14 = vector.shape_cast %13 : vector<1x8x128xf32> to vector<8x128xf32>
    %c0_i32_15 = arith.constant 0 : i32
    %15 = arith.index_cast %c0_i32_15 : i32 to index
    %c0_16 = arith.constant 0 : index
    %c0_17 = arith.constant 0 : index
    %16 = vector.load %arg1[%15, %c0_16, %c0_17] : memref<1x8x128xbf16, #tpu.memory_space<vmem>>, vector<1x8x128xbf16>
    %17 = vector.shape_cast %16 : vector<1x8x128xbf16> to vector<8x128xbf16>
    %cst = arith.constant dense<0.000000e+00> : vector<8x256xf32>
    %18 = tpu.matmul %17, %3, %cst {dimension_numbers = #tpu.dot_dimension_numbers<[1], [0], [0], [1], [0, 0, 1, 1], [], []>} : vector<8x128xbf16>, vector<128x256xbf16>, vector<8x256xf32> -> vector<8x256xf32>
    %19 = arith.truncf %6 : vector<8x128xf32> to vector<8x128xbf16>
    %cst_18 = arith.constant dense<0.000000e+00> : vector<8x256xf32>
    %20 = tpu.matmul %19, %4, %cst_18 {dimension_numbers = #tpu.dot_dimension_numbers<[1], [0], [0], [1], [0, 0, 1, 1], [], []>} : vector<8x128xbf16>, vector<128x256xbf16>, vector<8x256xf32> -> vector<8x256xf32>
    %21 = arith.addf %18, %20 : vector<8x256xf32>
    %22 = vector.extract_strided_slice %21 {offsets = [0, 0], sizes = [8, 128], strides = [1, 1]} : vector<8x256xf32> to vector<8x128xf32>
    %23 = arith.addf %10, %22 : vector<8x128xf32>
    %cst_19 = arith.constant 9.998000e-01 : f32
    %24 = vector.broadcast %cst_19 : f32 to vector<8x128xf32>
    %25 = arith.mulf %23, %24 : vector<8x128xf32>
    %26 = vector.extract_strided_slice %21 {offsets = [0, 128], sizes = [8, 128], strides = [1, 1]} : vector<8x256xf32> to vector<8x128xf32>
    %27 = arith.addf %12, %26 : vector<8x128xf32>
    %cst_20 = arith.constant 9.998000e-01 : f32
    %28 = vector.broadcast %cst_20 : f32 to vector<8x128xf32>
    %29 = arith.mulf %27, %28 : vector<8x128xf32>
    %cst_21 = arith.constant -2.000000e+01 : f32
    %30 = vector.broadcast %cst_21 : f32 to vector<8x128xf32>
    %31 = arith.subf %30, %8 : vector<8x128xf32>
    %cst_22 = arith.constant 2.500000e-01 : f32
    %32 = vector.broadcast %cst_22 : f32 to vector<8x128xf32>
    %33 = arith.mulf %32, %31 : vector<8x128xf32>
    %cst_23 = arith.constant 6.000000e+01 : f32
    %34 = vector.broadcast %cst_23 : f32 to vector<8x128xf32>
    %35 = arith.subf %34, %8 : vector<8x128xf32>
    %36 = arith.mulf %25, %35 : vector<8x128xf32>
    %37 = arith.addf %33, %36 : vector<8x128xf32>
    %cst_24 = arith.constant -1.000000e+02 : f32
    %38 = vector.broadcast %cst_24 : f32 to vector<8x128xf32>
    %39 = arith.subf %38, %8 : vector<8x128xf32>
    %40 = arith.mulf %29, %39 : vector<8x128xf32>
    %41 = arith.addf %37, %40 : vector<8x128xf32>
    %cst_25 = arith.constant 5.000000e-03 : f32
    %42 = vector.broadcast %cst_25 : f32 to vector<8x128xf32>
    %43 = arith.mulf %42, %41 : vector<8x128xf32>
    %44 = arith.addf %8, %43 : vector<8x128xf32>
    %cst_26 = arith.constant -1.000000e+01 : f32
    %45 = vector.broadcast %cst_26 : f32 to vector<8x128xf32>
    %46 = arith.addf %45, %14 : vector<8x128xf32>
    %47 = arith.subf %44, %46 : vector<8x128xf32>
    %cst_27 = arith.constant 0.000000e+00 : f32
    %48 = vector.broadcast %cst_27 : f32 to vector<8x128xf32>
    %49 = arith.cmpf ogt, %47, %48 : vector<8x128xf32>
    %50 = arith.extui %49 : vector<8x128xi1> to vector<8x128xi32>
    %51 = arith.sitofp %50 : vector<8x128xi32> to vector<8x128xf32>
    %cst_28 = arith.constant -7.000000e+01 : f32
    %52 = vector.broadcast %cst_28 : f32 to vector<8x128xf32>
    %53 = arith.select %49, %52, %44 : vector<8x128xi1>, vector<8x128xf32>
    %cst_29 = arith.constant 0.99999988 : f32
    %54 = vector.broadcast %cst_29 : f32 to vector<8x128xf32>
    %55 = arith.mulf %54, %14 : vector<8x128xf32>
    %cst_30 = arith.constant 5.000000e-02 : f32
    %56 = vector.broadcast %cst_30 : f32 to vector<8x128xf32>
    %57 = arith.addf %55, %56 : vector<8x128xf32>
    %58 = arith.select %49, %57, %55 : vector<8x128xi1>, vector<8x128xf32>
    %cst_31 = arith.constant 0.000000e+00 : f32
    %cst_32 = arith.constant 3.500000e+01 : f32
    %59 = vector.broadcast %cst_31 : f32 to vector<8x128xf32>
    %60 = arith.maximumf %59, %58 : vector<8x128xf32>
    %61 = vector.broadcast %cst_32 : f32 to vector<8x128xf32>
    %62 = arith.minimumf %61, %60 : vector<8x128xf32>
    %63 = arith.index_cast %c0_i32_15 : i32 to index
    %c0_33 = arith.constant 0 : index
    %c0_34 = arith.constant 0 : index
    %64 = vector.load %arg5[%63, %c0_33, %c0_34] : memref<1x8x128xf32, #tpu.memory_space<vmem>>, vector<1x8x128xf32>
    %65 = vector.shape_cast %64 : vector<1x8x128xf32> to vector<8x128xf32>
    %66 = vector.shape_cast %51 : vector<8x128xf32> to vector<1x8x128xf32>
    tpu.vector_store %arg5[%63, %c0_33, %c0_34], %66 {strides = array<i32>} : memref<1x8x128xf32, #tpu.memory_space<vmem>>, vector<1x8x128xf32>,
    %c1_i32 = arith.constant 1 : i32
    %c0_35 = arith.constant 0 : index
    %c0_36 = arith.constant 0 : index
    %c0_37 = arith.constant 0 : index
    %67 = vector.load %arg7[%c0_35, %c0_36, %c0_37] : memref<5x8x128xf32, #tpu.memory_space<vmem>>, vector<1x8x128xf32>
    %68 = vector.shape_cast %67 : vector<1x8x128xf32> to vector<8x128xf32>
    %69 = vector.shape_cast %51 : vector<8x128xf32> to vector<1x8x128xf32>
    tpu.vector_store %arg7[%c0_35, %c0_36, %c0_37], %69 {strides = array<i32>} : memref<5x8x128xf32, #tpu.memory_space<vmem>>, vector<1x8x128xf32>,
    %c1_38 = arith.constant 1 : index
    %c0_39 = arith.constant 0 : index
    %c0_40 = arith.constant 0 : index
    %70 = vector.load %arg7[%c1_38, %c0_39, %c0_40] : memref<5x8x128xf32, #tpu.memory_space<vmem>>, vector<1x8x128xf32>
    %71 = vector.shape_cast %70 : vector<1x8x128xf32> to vector<8x128xf32>
    %72 = vector.shape_cast %53 : vector<8x128xf32> to vector<1x8x128xf32>
    tpu.vector_store %arg7[%c1_38, %c0_39, %c0_40], %72 {strides = array<i32>} : memref<5x8x128xf32, #tpu.memory_space<vmem>>, vector<1x8x128xf32>,
    %c2_41 = arith.constant 2 : index
    %c0_42 = arith.constant 0 : index
    %c0_43 = arith.constant 0 : index
    %73 = vector.load %arg7[%c2_41, %c0_42, %c0_43] : memref<5x8x128xf32, #tpu.memory_space<vmem>>, vector<1x8x128xf32>
    %74 = vector.shape_cast %73 : vector<1x8x128xf32> to vector<8x128xf32>
    %75 = vector.shape_cast %25 : vector<8x128xf32> to vector<1x8x128xf32>
    tpu.vector_store %arg7[%c2_41, %c0_42, %c0_43], %75 {strides = array<i32>} : memref<5x8x128xf32, #tpu.memory_space<vmem>>, vector<1x8x128xf32>,
    %c3_44 = arith.constant 3 : index
    %c0_45 = arith.constant 0 : index
    %c0_46 = arith.constant 0 : index
    %76 = vector.load %arg7[%c3_44, %c0_45, %c0_46] : memref<5x8x128xf32, #tpu.memory_space<vmem>>, vector<1x8x128xf32>
    %77 = vector.shape_cast %76 : vector<1x8x128xf32> to vector<8x128xf32>
    %78 = vector.shape_cast %29 : vector<8x128xf32> to vector<1x8x128xf32>
    tpu.vector_store %arg7[%c3_44, %c0_45, %c0_46], %78 {strides = array<i32>} : memref<5x8x128xf32, #tpu.memory_space<vmem>>, vector<1x8x128xf32>,
    %c4_47 = arith.constant 4 : index
    %c0_48 = arith.constant 0 : index
    %c0_49 = arith.constant 0 : index
    %79 = vector.load %arg7[%c4_47, %c0_48, %c0_49] : memref<5x8x128xf32, #tpu.memory_space<vmem>>, vector<1x8x128xf32>
    %80 = vector.shape_cast %79 : vector<1x8x128xf32> to vector<8x128xf32>
    %81 = vector.shape_cast %62 : vector<8x128xf32> to vector<1x8x128xf32>
    tpu.vector_store %arg7[%c4_47, %c0_48, %c0_49], %81 {strides = array<i32>} : memref<5x8x128xf32, #tpu.memory_space<vmem>>, vector<1x8x128xf32>,
    %c0_i32_50 = arith.constant 0 : i32
    %82 = arith.cmpi eq, %arg0, %c0_i32_50 : i32
    %83 = arith.extui %82 : i1 to i32
    %c0_i32_51 = arith.constant 0 : i32
    %84 = arith.cmpi ne, %83, %c0_i32_51 : i32
    scf.if %84 {
      %c0_52 = arith.constant 0 : index
      %c0_53 = arith.constant 0 : index
      %c0_54 = arith.constant 0 : index
      %85 = vector.load %arg7[%c0_52, %c0_53, %c0_54] : memref<5x8x128xf32, #tpu.memory_space<vmem>>, vector<5x8x128xf32>
      %c0_55 = arith.constant 0 : index
      %c0_56 = arith.constant 0 : index
      %c0_57 = arith.constant 0 : index
      %86 = vector.load %arg6[%c0_55, %c0_56, %c0_57] : memref<5x8x128xf32, #tpu.memory_space<vmem>>, vector<5x8x128xf32>
      tpu.vector_store %arg6[%c0_55, %c0_56, %c0_57], %85 {strides = array<i32>} : memref<5x8x128xf32, #tpu.memory_space<vmem>>, vector<5x8x128xf32>,
    } else {
    }
    return
  }
  func.func @transform_0(%arg0: i32) -> (i32, i32, i32) {
    %c0_i32 = arith.constant 0 : i32
    %c0_i32_0 = arith.constant 0 : i32
    %c0_i32_1 = arith.constant 0 : i32
    return %arg0, %c0_i32, %c0_i32_0 : i32, i32, i32
  }
  func.func @transform_1(%arg0: i32) -> (i32, i32) {
    %c0_i32 = arith.constant 0 : i32
    %c0_i32_0 = arith.constant 0 : i32
    %c0_i32_1 = arith.constant 0 : i32
    return %c0_i32, %c0_i32_0 : i32, i32
  }
  func.func @transform_2(%arg0: i32) -> (i32, i32) {
    %c0_i32 = arith.constant 0 : i32
    %c0_i32_0 = arith.constant 0 : i32
    %c0_i32_1 = arith.constant 0 : i32
    return %c0_i32, %c0_i32_0 : i32, i32
  }
  func.func @transform_3(%arg0: i32) -> (i32, i32, i32) {
    %c0_i32 = arith.constant 0 : i32
    %c0_i32_0 = arith.constant 0 : i32
    %c0_i32_1 = arith.constant 0 : i32
    %c0_i32_2 = arith.constant 0 : i32
    return %c0_i32, %c0_i32_0, %c0_i32_1 : i32, i32, i32
  }
  func.func @transform_4(%arg0: i32) -> (i32, i32, i32) {
    %c0_i32 = arith.constant 0 : i32
    %c0_i32_0 = arith.constant 0 : i32
    %c0_i32_1 = arith.constant 0 : i32
    return %arg0, %c0_i32, %c0_i32_0 : i32, i32, i32
  }
  func.func @transform_5(%arg0: i32) -> (i32, i32, i32) {
    %c0_i32 = arith.constant 0 : i32
    %c0_i32_0 = arith.constant 0 : i32
    %c0_i32_1 = arith.constant 0 : i32
    %c0_i32_2 = arith.constant 0 : i32
    return %c0_i32, %c0_i32_0, %c0_i32_1 : i32, i32, i32
  }
}

</mosaic_0001>

<bundles_post_ra>
// kernel: tpu_custom_call.1
= control target key start
LH: loop header
LB: loop body
LE: loop exit
PB: predicated region body
PF: predicated region fallthrough
CT: control target
= control target key end

     0   :  { %11 = vsyncpa [#allocation4], 0  ;;  %s808_s0 = inlined_call_operand.hbm [shape: bf16[1,8,128], index: 0, kind: input, shape index: {}]   ;;  %s809_s1 = inlined_call_operand.hbm [shape: bf16[128,256], index: 1, kind: input, shape index: {}]   ;;  %s810_s2 = inlined_call_operand.hbm [shape: bf16[128,256], index: 2, kind: input, shape index: {}]   ;;  %s811_s3 = inlined_call_operand.hbm [shape: f32[5,8,128], index: 3, kind: input, shape index: {}]   ;;  %s812_s4 = inlined_call_operand.hbm [shape: f32[1,8,128], index: 4, kind: output, shape index: {0}]   ;;  %s813_s5 = inlined_call_operand.hbm [shape: f32[5,8,128], index: 5, kind: output, shape index: {1}]  }
   0x1   :  { %12 = vsyncpa [#allocation7], 0 }
   0x2   :  { %13 = vsyncpa [#allocation10], 0 }
   0x3   :  { %14 = vsyncpa [#allocation5], 0 }
   0x4   :  { %15 = vsyncpa [#allocation13], 0  ;;  %s684_s18 = smov [#allocation6]   ;;  %s542_s22 = scalar_lea.hbm %s809_s1, 2048 }
   0x5   :  { %s31_s19 = sshll.u32 %s684_s18, 4  ;;  %p543_p0 = scmp.ne.s32.totalorder %s809_s1, %s542_s22  ;;  %s32_s19 = int_to_ptr.vmem [resolvable:$true] %s31_s19 }
   0x6   :  { %p546_p1 = scmp.lt.u32.totalorder %s542_s22, %s809_s1 }
   0x8   :  { %p548_p2 = pnand %p546_p1, %p543_p0 }
   0xa   :  { %551 = shalt.err (!%p548_p2)
}
   0xb   :  { %s552_s27 = scalar_lea.vmem %s32_s19, 2048  ;;  %p557_p4 = scmp.lt.s32.totalorder %s32_s19, %s32_s19 }
   0xc   :  { %p553_p3 = scmp.ne.s32.totalorder %s32_s19, %s552_s27  ;;  %p558_p5 = scmp.lt.s32.totalorder %s552_s27, %s552_s27 }
   0xe   :  { %p559_p6 = por %p558_p5, %p557_p4 }
  0x10   :  { %p560_p7 = pnand %p559_p6, %p553_p3 }
  0x12   :  { %563 = shalt.err (!%p560_p7)
}
  0x13   :  { %s685_s28 = smov 128   ;;  %s686_s29 = smov 8  }
  0x14   :  { %37 = dma.hbm_to_vmem [thread:$0]  %s809_s1, 2048, %s32_s19, [#allocation7], %s685_s28, %s685_s28, %s686_s29  }
  0x15   :  { %s687_s7 = smov [#allocation3]   ;;  %s688_s9 = smov [#allocation8]  }
  0x16   :  { %s22_s8 = sshll.u32 %s687_s7, 4  ;;  %s43_s10 = sshll.u32 %s688_s9, 4  ;;  %s23_s8 = int_to_ptr.vmem [resolvable:$true] %s22_s8  ;;  %s44_s10 = int_to_ptr.vmem [resolvable:$true] %s43_s10 }
  0x17   :  { %s564_s13 = scalar_lea.hbm %s808_s0, 64 }
  0x18   :  { %p565_p8 = scmp.ne.s32.totalorder %s808_s0, %s564_s13  ;;  %p568_p9 = scmp.lt.u32.totalorder %s564_s13, %s808_s0 }
  0x1a   :  { %p570_p10 = pnand %p568_p9, %p565_p8 }
  0x1c   :  { %573 = shalt.err (!%p570_p10)
}
  0x1d   :  { %s574_s1 = scalar_lea.vmem %s23_s8, 64  ;;  %p579_p12 = scmp.lt.s32.totalorder %s23_s8, %s23_s8 }
  0x1e   :  { %p575_p11 = scmp.ne.s32.totalorder %s23_s8, %s574_s1  ;;  %p580_p13 = scmp.lt.s32.totalorder %s574_s1, %s574_s1 }
  0x20   :  { %p581_p0 = por %p580_p13, %p579_p12 }
  0x22   :  { %p582_p1 = pnand %p581_p0, %p575_p11 }
  0x24   :  { %585 = shalt.err (!%p582_p1)
}
  0x25   :  { %25 = dma.hbm_to_vmem [thread:$0]  %s808_s0, 64, %s23_s8, [#allocation4]  }
  0x26   :  { %s586_s22 = scalar_lea.hbm %s810_s2, 2048 }
  0x27   :  { %p587_p2 = scmp.ne.s32.totalorder %s810_s2, %s586_s22  ;;  %p590_p3 = scmp.lt.u32.totalorder %s586_s22, %s810_s2 }
  0x29   :  { %p592_p4 = pnand %p590_p3, %p587_p2 }
  0x2b   :  { %595 = shalt.err (!%p592_p4)
}
  0x2c   :  { %s596_s27 = scalar_lea.vmem %s44_s10, 2048  ;;  %p601_p6 = scmp.lt.s32.totalorder %s44_s10, %s44_s10 }
  0x2d   :  { %p597_p5 = scmp.ne.s32.totalorder %s44_s10, %s596_s27  ;;  %p602_p7 = scmp.lt.s32.totalorder %s596_s27, %s596_s27 }
  0x2f   :  { %p603_p8 = por %p602_p7, %p601_p6 }
  0x31   :  { %p604_p9 = pnand %p603_p8, %p597_p5 }
  0x33   :  { %607 = shalt.err (!%p604_p9)
}
  0x34   :  { %49 = dma.hbm_to_vmem [thread:$0]  %s810_s2, 2048, %s44_s10, [#allocation7], %s685_s28, %s685_s28, %s686_s29  }
  0x35   :  { %s689_s6 = smov [#allocation9]   ;;  %s608_s11 = scalar_lea.hbm %s811_s3, 640 }
  0x36   :  { %s55_s7 = sshll.u32 %s689_s6, 4  ;;  %p609_p10 = scmp.ne.s32.totalorder %s811_s3, %s608_s11  ;;  %s56_s7 = int_to_ptr.vmem [resolvable:$true] %s55_s7 }
  0x37   :  { %p612_p11 = scmp.lt.u32.totalorder %s608_s11, %s811_s3 }
  0x39   :  { %p614_p12 = pnand %p612_p11, %p609_p10 }
  0x3b   :  { %617 = shalt.err (!%p614_p12)
}
  0x3c   :  { %s618_s16 = scalar_lea.vmem %s56_s7, 640  ;;  %p623_p0 = scmp.lt.s32.totalorder %s56_s7, %s56_s7 }
  0x3d   :  { %p619_p13 = scmp.ne.s32.totalorder %s56_s7, %s618_s16  ;;  %p624_p1 = scmp.lt.s32.totalorder %s618_s16, %s618_s16 }
  0x3f   :  { %p625_p2 = por %p624_p1, %p623_p0 }
  0x41   :  { %p626_p3 = pnand %p625_p2, %p619_p13 }
  0x43   :  { %629 = shalt.err (!%p626_p3)
}
  0x44   :  { %61 = dma.hbm_to_vmem [thread:$0]  %s811_s3, 640, %s56_s7, [#allocation10], %s685_s28, %s685_s28, %s686_s29  }
  0x45   :  { %674 = dma.done.wait [#allocation4], 64  }
  0x46   :  { %675 = vsyncadd [#allocation4], 4294967232 }
  0x47   :  { %676 = dma.done.wait [#allocation7], 4096  }
  0x48   :  { %677 = vsyncadd [#allocation7], 4294963200 }
  0x49   :  { %678 = dma.done.wait [#allocation10], 640  }
  0x4a   :  { %679 = vsyncadd [#allocation10], 4294966656  ;;  %v690_v0 = vmov 0   ;;  %v494_v1 = vld [vmem:[#allocation8 + $0x4] ss:$8 sps:$4 sm:$0xff]   ;;  %v81_v38 = vld [vmem:[#allocation9 + $0x10] sm:$0xff] }
  0x4b   :  { %244 = vmatprep.mubr.bf16.mxu0 %v690_v0  ;;  %365 = vmatprep.mubr.bf16.mxu1 %v690_v0  ;;  %v496_v2 = vld [vmem:[#allocation6 + $0x4] ss:$8 sps:$4 sm:$0xff]   ;;  %v498_v3 = vld [vmem:[#allocation8] ss:$8 sps:$4 sm:$0xff]   ;;  %v500_v5 = vld [vmem:[#allocation8 + $0x14] ss:$8 sps:$4 sm:$0xff]  }
  0x4c   :  { %212 = vmatprep.subr.bf16.mxu0 %v494_v1  ;;  %v499_v4 = vld [vmem:[#allocation6] ss:$8 sps:$4 sm:$0xff]   ;;  %333 = vmatprep.subr.bf16.mxu1 %v496_v2  ;;  %v502_v6 = vld [vmem:[#allocation6 + $0x14] ss:$8 sps:$4 sm:$0xff]   ;;  %v504_v7 = vld [vmem:[#allocation8 + $0x10] ss:$8 sps:$4 sm:$0xff]  }
  0x4d   :  { %213 = vmatpush1.bf16.msra.mxu0 %v498_v3  ;;  %334 = vmatpush1.bf16.msra.mxu1 %v499_v4  ;;  %v505_v8 = vld [vmem:[#allocation6 + $0x10] ss:$8 sps:$4 sm:$0xff]   ;;  %v506_v9 = vld [vmem:[#allocation8 + $0x24] ss:$8 sps:$4 sm:$0xff]   ;;  %v510_v11 = vld [vmem:[#allocation8 + $0x20] ss:$8 sps:$4 sm:$0xff]  }
  0x4e   :  { %214 = vmatprep.subr.bf16.mxu0 %v500_v5  ;;  %335 = vmatprep.subr.bf16.mxu1 %v502_v6  ;;  %v508_v10 = vld [vmem:[#allocation6 + $0x24] ss:$8 sps:$4 sm:$0xff]   ;;  %v511_v12 = vld [vmem:[#allocation6 + $0x20] ss:$8 sps:$4 sm:$0xff]   ;;  %v512_v13 = vld [vmem:[#allocation8 + $0x34] ss:$8 sps:$4 sm:$0xff]  }
  0x4f   :  { %v514_v14 = vld [vmem:[#allocation6 + $0x34] ss:$8 sps:$4 sm:$0xff]   ;;  %v516_v15 = vld [vmem:[#allocation8 + $0x30] ss:$8 sps:$4 sm:$0xff]   ;;  %v518_v17 = vld [vmem:[#allocation8 + $0x44] ss:$8 sps:$4 sm:$0xff]  }
  0x50   :  { %v517_v16 = vld [vmem:[#allocation6 + $0x30] ss:$8 sps:$4 sm:$0xff]   ;;  %v520_v18 = vld [vmem:[#allocation6 + $0x44] ss:$8 sps:$4 sm:$0xff]   ;;  %v522_v19 = vld [vmem:[#allocation8 + $0x40] ss:$8 sps:$4 sm:$0xff]  }
  0x51   :  { %215 = vmatpush1.bf16.msra.mxu0 %v504_v7  ;;  %336 = vmatpush1.bf16.msra.mxu1 %v505_v8  ;;  %v523_v20 = vld [vmem:[#allocation6 + $0x40] ss:$8 sps:$4 sm:$0xff]   ;;  %v524_v21 = vld [vmem:[#allocation8 + $0x54] ss:$8 sps:$4 sm:$0xff]   ;;  %v528_v23 = vld [vmem:[#allocation8 + $0x50] ss:$8 sps:$4 sm:$0xff]  }
  0x52   :  { %216 = vmatprep.subr.bf16.mxu0 %v506_v9  ;;  %337 = vmatprep.subr.bf16.mxu1 %v508_v10  ;;  %v526_v22 = vld [vmem:[#allocation6 + $0x54] ss:$8 sps:$4 sm:$0xff]   ;;  %v529_v24 = vld [vmem:[#allocation6 + $0x50] ss:$8 sps:$4 sm:$0xff]   ;;  %v530_v25 = vld [vmem:[#allocation8 + $0x64] ss:$8 sps:$4 sm:$0xff]  }
  0x53   :  { %v532_v26 = vld [vmem:[#allocation6 + $0x64] ss:$8 sps:$4 sm:$0xff]   ;;  %v534_v27 = vld [vmem:[#allocation8 + $0x60] ss:$8 sps:$4 sm:$0xff]   ;;  %v536_v29 = vld [vmem:[#allocation8 + $0x74] ss:$8 sps:$4 sm:$0xff]  }
  0x54   :  { %v535_v28 = vld [vmem:[#allocation6 + $0x60] ss:$8 sps:$4 sm:$0xff]   ;;  %v538_v30 = vld [vmem:[#allocation6 + $0x74] ss:$8 sps:$4 sm:$0xff]   ;;  %v540_v31 = vld [vmem:[#allocation8 + $0x70] ss:$8 sps:$4 sm:$0xff]  }
  0x55   :  { %217 = vmatpush1.bf16.msra.mxu0 %v510_v11  ;;  %338 = vmatpush1.bf16.msra.mxu1 %v511_v12  ;;  %v541_v32 = vld [vmem:[#allocation6 + $0x70] ss:$8 sps:$4 sm:$0xff]   ;;  %v79_v33 = vld [vmem:[#allocation9] sm:$0xff]  ;;  %v130_v35 = vld [vmem:[#allocation3] sm:$0xf]  ;;  %s691_s3 = smov [#allocation11]  }
  0x56   :  { %218 = vmatprep.subr.bf16.mxu0 %v512_v13  ;;  %339 = vmatprep.subr.bf16.mxu1 %v514_v14  ;;  %v131_v34 = vpack.c.bf16 %v79_v33, %v79_v33  ;;  %v80_v36 = vld [vmem:[#allocation9 + $0x8] sm:$0xff]  ;;  %v82_v43 = vld [vmem:[#allocation9 + $0x18] sm:$0xff]  ;;  %v83_v60 = vld [vmem:[#allocation9 + $0x20] sm:$0xff]  ;;  %s424_s17 = sshll.u32 %s691_s3, 4  ;;  %v692_v4 = vmov 0.0   ;;  %s693_s1 = smov [#allocation12]   ;;  %s425_s17 = int_to_ptr.vmem [resolvable:$true] %s424_s17 }
  0x57   :  { %v378_v41 = vsub.f32 -20.0, %v80_v36  ;;  %v380_v49 = vsub.f32 60.0, %v80_v36  ;;  %v383_v53 = vsub.f32 -100.0, %v80_v36  ;;  %v394_v62 = vmul.f32 0.9999999, %v83_v60  ;;  %s433_s18 = sshll.u32 %s693_s1, 4  ;;  %p635_p5 = scmp.lt.s32.totalorder %s425_s17, %s425_s17  ;;  %s434_s18 = int_to_ptr.vmem [resolvable:$true] %s433_s18 }
  0x58   :  { %v388_v0 = vadd.f32 -10.0, %v83_v60  ;;  %s630_s19 = scalar_lea.vmem %s425_s17, 128 }
  0x59   :  { %219 = vmatpush1.bf16.msra.mxu0 %v516_v15  ;;  %340 = vmatpush1.bf16.msra.mxu1 %v517_v16  ;;  %v379_v55 = vmul.f32 0.25, %v378_v41  ;;  %v395_v2 = vadd.f32 0.05, %v394_v62  ;;  %p631_p4 = scmp.ne.s32.totalorder %s425_s17, %s630_s19  ;;  %p636_p6 = scmp.lt.s32.totalorder %s630_s19, %s630_s19 }
  0x5a   :  { %220 = vmatprep.subr.bf16.mxu0 %v518_v17  ;;  %341 = vmatprep.subr.bf16.mxu1 %v520_v18 }
  0x5b   :  { %p637_p7 = por %p636_p6, %p635_p5 }
  0x5d   :  { %221 = vmatpush1.bf16.msra.mxu0 %v522_v19  ;;  %342 = vmatpush1.bf16.msra.mxu1 %v523_v20  ;;  %p638_p8 = pnand %p637_p7, %p631_p4 }
  0x5e   :  { %222 = vmatprep.subr.bf16.mxu0 %v524_v21  ;;  %343 = vmatprep.subr.bf16.mxu1 %v526_v22 }
  0x61   :  { %223 = vmatpush1.bf16.msra.mxu0 %v528_v23  ;;  %344 = vmatpush1.bf16.msra.mxu1 %v529_v24 }
  0x62   :  { %224 = vmatprep.subr.bf16.mxu0 %v530_v25  ;;  %345 = vmatprep.subr.bf16.mxu1 %v532_v26 }
  0x65   :  { %225 = vmatpush1.bf16.msra.mxu0 %v534_v27  ;;  %346 = vmatpush1.bf16.msra.mxu1 %v535_v28 }
  0x66   :  { %226 = vmatprep.subr.bf16.mxu0 %v536_v29  ;;  %347 = vmatprep.subr.bf16.mxu1 %v538_v30 }
  0x69   :  { %227 = vmatpush1.bf16.msra.mxu0 %v540_v31  ;;  %348 = vmatpush1.bf16.msra.mxu1 %v541_v32 }
  0x6c   :  { %245 = vmatmul.mubr.bf16.vlgmr.msra.gmra.mrb[0].mxu0 %v131_v34  ;;  %366 = vmatmul.mubr.bf16.vlgmr.msra.gmra.mrb[0].mxu1 %v130_v35 }
 0x13f   :  { %v246_v37 = vpop.f32.mrb[0].mxu0  ;;  %v367_v39 = vpop.f32.mrb[0].mxu1 }
 0x140   :  { %v368_v40 = vadd.f32 %v367_v39, %v246_v37  ;;  %v248_v42 = vpop.f32.mrb[1].mxu0  ;;  %v369_v44 = vpop.f32.mrb[1].mxu1 }
 0x141   :  { %v370_v45 = vadd.f32 %v369_v44, %v248_v42  ;;  %v250_v46 = vpop.f32.mrb[2].mxu0  ;;  %v371_v47 = vpop.f32.mrb[2].mxu1 }
 0x142   :  { %v374_v48 = vadd.f32 %v368_v40, %v81_v38  ;;  %v251_v50 = vpop.f32.mrb[3].mxu0  ;;  %v372_v51 = vpop.f32.mrb[3].mxu1 }
 0x143   :  { %v376_v52 = vadd.f32 %v370_v45, %v82_v43 }
 0x144   :  { %v375_v54 = vmul.f32 0.9998, %v374_v48 }
 0x145   :  { %v377_v56 = vmul.f32 0.9998, %v376_v52 }
 0x146   :  { %v381_v57 = vmul.f32 %v380_v49, %v375_v54  ;;  %415 = vst [vmem:[#allocation12 + $0x10] sm:$0xff] %v375_v54 }
 0x147   :  { %v384_v58 = vmul.f32 %v383_v53, %v377_v56  ;;  %416 = vst [vmem:[#allocation12 + $0x18] sm:$0xff] %v377_v56 }
 0x148   :  { %v382_v59 = vadd.f32 %v381_v57, %v379_v55 }
 0x14a   :  { %v385_v61 = vadd.f32 %v384_v58, %v382_v59 }
 0x14c   :  { %v386_v63 = vmul.f32 0.005, %v385_v61 }
 0x14e   :  { %v387_v1 = vadd.f32 %v386_v63, %v80_v36 }
 0x150   :  { %v389_v3 = vsub.f32 %v387_v1, %v388_v0 }
 0x152   :  { %vm390_vm0 = vcmp.gt.f32.partialorder %v389_v3, 0.0 }
 0x153   :  { %v483_v5 = vsel %vm390_vm0, 1.0, %v692_v4  ;;  %v393_v6 = vsel %vm390_vm0, -70.0, %v387_v1  ;;  %v396_v7 = vsel %vm390_vm0, %v395_v2, %v394_v62 }
 0x154   :  { %v397_v8 = vmax.f32 %v396_v7, 0.0  ;;  %399 = vst [vmem:[#allocation11] sm:$0xff] %v483_v5  ;;  %413 = vst [vmem:[#allocation12] sm:$0xff] %v483_v5 }
 0x155   :  { %414 = vst [vmem:[#allocation12 + $0x8] sm:$0xff] %v393_v6 }
 0x156   :  { %641 = shalt.err (!%p638_p8)
}
 0x157   :  { %s642_s22 = scalar_lea.hbm %s812_s4, 128 }
 0x158   :  { %p643_p9 = scmp.ne.s32.totalorder %s812_s4, %s642_s22  ;;  %p646_p10 = scmp.lt.u32.totalorder %s642_s22, %s812_s4 }
 0x15a   :  { %p648_p11 = pnand %p646_p10, %p643_p9 }
 0x15c   :  { %651 = shalt.err (!%p648_p11)
}
 0x15d   :  { %427 = dma.vmem_to_hbm [thread:$0]  %s425_s17, 128, %s812_s4, [#allocation5]   ;;  %v398_v9 = vmin.f32 %v397_v8, 35.0 }
 0x15e   :  { %s652_s30 = scalar_lea.vmem %s434_s18, 640  ;;  %p657_p13 = scmp.lt.s32.totalorder %s434_s18, %s434_s18 }
 0x15f   :  { %417 = vst [vmem:[#allocation12 + $0x20] sm:$0xff] %v398_v9  ;;  %p653_p12 = scmp.ne.s32.totalorder %s434_s18, %s652_s30  ;;  %p658_p0 = scmp.lt.s32.totalorder %s652_s30, %s652_s30 }
 0x161   :  { %p659_p1 = por %p658_p0, %p657_p13 }
 0x163   :  { %p660_p2 = pnand %p659_p1, %p653_p12 }
 0x165   :  { %663 = shalt.err (!%p660_p2)
}
 0x166   :  { %s664_s8 = scalar_lea.hbm %s813_s5, 640 }
 0x167   :  { %p665_p3 = scmp.ne.s32.totalorder %s813_s5, %s664_s8  ;;  %p668_p4 = scmp.lt.u32.totalorder %s664_s8, %s813_s5 }
 0x169   :  { %p670_p5 = pnand %p668_p4, %p665_p3 }
 0x16b   :  { %673 = shalt.err (!%p670_p5)
}
 0x16c   :  { %439 = dma.vmem_to_hbm [thread:$0]  %s434_s18, 640, %s813_s5, [#allocation13], %s685_s28, %s685_s28, %s686_s29  }
 0x16d   :  { %680 = dma.done.wait [#allocation5], 128  }
 0x16e   :  { %681 = vsyncadd [#allocation5], 4294967168 }
 0x16f   :  { %682 = dma.done.wait [#allocation13], 640  }
 0x170   :  { %683 = vsyncadd [#allocation13], 4294966656 }
 0x171   :  { %446 = vsyncpa [#allocation4], 1 }
 0x172   :  { %447 = vsyncpa [#allocation7], 1 }
 0x173   :  { %448 = vsyncpa [#allocation10], 1 }
 0x174   :  { %449 = vsyncpa [#allocation5], 1 }
 0x175   :  { %450 = vsyncpa [#allocation13], 1 }

</bundles_post_ra>
